<compile_context>
chip_gen: v7x
topology: tpu7x:2x2x1
jax: 0.10.0
libtpu: 0.0.40
codegen_flags: <defaults>
</compile_context>

<pallas_src>
import functools

import jax
import jax.numpy as jnp
import numpy as np
from jax.experimental import pallas as pl
from jax.experimental.pallas import tpu as pltpu


def _convt_relu_kernel(x_ref, w_ref, b_ref, o_ref, yf_ref, col_ref,
                       *, k, h, w, ho, wo, cin):
    # x_ref  : (1, Cin, H*W)        one image, NCHW with flattened spatial
    # w_ref  : (Cout, K*K*Cin)      flipped + flattened ConvTranspose2d weight
    # b_ref  : (Cout, 1)
    # o_ref  : (1, Cout, Ho*Wo)     channels-first, flattened output spatial
    # yf_ref : (Cin, (Hp+1)*Wo)     zero-padded input, flat with row stride Wo
    # col_ref: (K*K*Cin, Ho*Wo)     im2col matrix
    #
    # yf holds x embedded at row offset K-1 and column offset K-1 inside a
    # (Hp+1, Wo)-shaped zero buffer, flattened per channel.  With that layout
    #     xpad[ci, i+kh, j+kw] == yf[ci, (i*Wo + j) + kh*Wo + kw]
    # for every output position q = i*Wo + j and tap (kh, kw): the K-1 columns of
    # left padding absorb the row wrap-around and the extra (+1) zero row absorbs
    # the bottom wrap-around, so each tap is just a static lane shift of yf.

    # Zero the padded buffer (border + safety row must be zero on every grid step;
    # scratch is uninitialized / persistent across steps).  ~6 KB, trivial.
    yf_ref[...] = jnp.zeros_like(yf_ref)

    # Embed the image: y[ci, (K-1)+r, (K-1)+c] = x[ci, r, c].
    for r in range(h):
        start = (k - 1 + r) * wo + (k - 1)
        yf_ref[:, start:start + w] = x_ref[0, :, r * w:(r + 1) * w]

    # im2col via static lane-shifted slices (one slab copy per tap).
    for kh in range(k):
        for kw in range(k):
            tap = kh * k + kw
            d = kh * wo + kw
            col_ref[tap * cin:(tap + 1) * cin, :] = yf_ref[:, d:d + ho * wo]

    # Single deep MXU contraction over K*K*Cin, f32 accumulation.
    acc = jax.lax.dot_general(
        w_ref[...], col_ref[...],
        dimension_numbers=(((1,), (0,)), ((), ())),
        preferred_element_type=jnp.float32,
    )
    acc = acc + b_ref[...]                       # (Cout, 1) broadcasts over lanes
    # ac_op == 'ReLU'
    o_ref[0] = jnp.maximum(acc, 0.0).astype(o_ref.dtype)


@jax.jit
def convt_relu(x_nchw, weight, bias):
    """Forward pass of ConvT(in_c, out_c, kernel_size, 'ReLU').

    x_nchw : (N, Cin, H, W)        float32
    weight : (Cin, Cout, K, K)     PyTorch ConvTranspose2d weight layout
    bias   : (Cout,)
    returns: (N, Cout, H+K-1, W+K-1)
    """
    n, cin, h, w = x_nchw.shape
    cout, k = weight.shape[1], weight.shape[2]
    ho, wo = h + k - 1, w + k - 1
    flat_len = (h + 2 * k - 1) * wo              # (Hp + 1) * Wo,  Hp = H + 2*(K-1)

    # Tiny parameter prep (Cin*Cout*K*K elements).  Activations get only a free
    # collapsing reshape -- no transpose, no pad on the wrapper side.
    w2 = jnp.transpose(weight[:, :, ::-1, ::-1], (1, 2, 3, 0)).reshape(cout, k * k * cin)
    b2 = bias.reshape(cout, 1)
    x_flat = x_nchw.reshape(n, cin, h * w)

    kernel = functools.partial(_convt_relu_kernel,
                               k=k, h=h, w=w, ho=ho, wo=wo, cin=cin)

    out_flat = pl.pallas_call(
        kernel,
        out_shape=jax.ShapeDtypeStruct((n, cout, ho * wo), x_nchw.dtype),
        grid_spec=pltpu.PrefetchScalarGridSpec(
            num_scalar_prefetch=0,
            grid=(n,),
            in_specs=[
                pl.BlockSpec((1, cin, h * w), lambda b: (b, 0, 0)),
                pl.BlockSpec((cout, k * k * cin), lambda b: (0, 0)),
                pl.BlockSpec((cout, 1), lambda b: (0, 0)),
            ],
            out_specs=pl.BlockSpec((1, cout, ho * wo), lambda b: (b, 0, 0)),
            scratch_shapes=[
                pltpu.VMEM((cin, flat_len), jnp.float32),
                pltpu.VMEM((k * k * cin, ho * wo), jnp.float32),
            ],
        ),
        compiler_params=pltpu.CompilerParams(
            dimension_semantics=("parallel",),   # batch shards across TCs on v7x
        ),
    )(x_flat, w2, b2)

    # Output is already channels-first; only a free reshape back to 4-D NCHW.
    return out_flat.reshape(n, cout, ho, wo)


def _reference_numpy(x, weight, bias):
    """Direct PyTorch ConvTranspose2d(stride=1) + ReLU semantics, in numpy."""
    x = np.asarray(x, np.float64)
    weight = np.asarray(weight, np.float64)
    bias = np.asarray(bias, np.float64)
    n, cin, h, w = x.shape
    cout, k = weight.shape[1], weight.shape[2]
    ho, wo = h + k - 1, w + k - 1
    out = np.zeros((n, cout, ho, wo), np.float64)
    for kh in range(k):
        for kw in range(k):
            out[:, :, kh:kh + h, kw:kw + w] += np.einsum(
                "nchw,cd->ndhw", x, weight[:, :, kh, kw])
    out += bias[None, :, None, None]
    return np.maximum(out, 0.0)


if __name__ == "__main__":
    # Small shapes consistent with the module: ConvT(4, 8, kernel_size=3, 'ReLU')
    N, CIN, COUT, K, H, W = 2, 4, 8, 3, 16, 16

    key = jax.random.PRNGKey(0)
    kx, kw, kb = jax.random.split(key, 3)

    x = jax.random.normal(kx, (N, CIN, H, W), dtype=jnp.float32)
    # Deterministic param init (mimics PyTorch uniform(-1/sqrt(fan), 1/sqrt(fan)))
    fan = CIN * K * K
    bound = 1.0 / np.sqrt(fan)
    weight = jax.random.uniform(kw, (CIN, COUT, K, K), jnp.float32, -bound, bound)
    bias = jax.random.uniform(kb, (COUT,), jnp.float32, -bound, bound)

    out = convt_relu(x, weight, bias)
    out = jax.block_until_ready(out)

    ref = _reference_numpy(x, weight, bias)
    np.testing.assert_allclose(np.asarray(out), ref, rtol=1e-4, atol=1e-5)

    print("KERNEL_OK")
</pallas_src>

<mosaic_0001>
module attributes {stable_mosaic.version = 11 : i64} {
  func.func @_convt_relu_kernel(%arg0: i32, %arg1: memref<1x4x256xf32, #tpu.memory_space<vmem>>, %arg2: memref<8x36xf32, #tpu.memory_space<vmem>>, %arg3: memref<8x1xf32, #tpu.memory_space<vmem>>, %arg4: memref<1x8x324xf32, #tpu.memory_space<vmem>>, %arg5: memref<4x378xf32, #tpu.memory_space<vmem>>, %arg6: memref<36x324xf32, #tpu.memory_space<vmem>>) attributes {dimension_semantics = [#tpu.dimension_semantics<parallel>], iteration_bounds = array<i64: 2>, scalar_prefetch = 0 : i64, scratch_operands = 2 : i64, tpu.core_type = #tpu.core_type<tc>, window_params = [{transform_indices = @transform_0, window_bounds = array<i64: 1, 4, 256>}, {pipeline_mode = #tpu.pipeline_mode<synchronous>, transform_indices = @transform_1, window_bounds = array<i64: 8, 36>}, {pipeline_mode = #tpu.pipeline_mode<synchronous>, transform_indices = @transform_2, window_bounds = array<i64: 8, 1>}, {transform_indices = @transform_3, window_bounds = array<i64: 1, 8, 324>}]} {
    %cst = arith.constant 0.000000e+00 : f32
    %0 = vector.broadcast %cst : f32 to vector<4x378xf32>
    %c0 = arith.constant 0 : index
    %c0_0 = arith.constant 0 : index
    %1 = vector.load %arg5[%c0, %c0_0] : memref<4x378xf32, #tpu.memory_space<vmem>>, vector<4x378xf32>
    tpu.vector_store %arg5[%c0, %c0_0], %0 {strides = array<i32>} : memref<4x378xf32, #tpu.memory_space<vmem>>, vector<4x378xf32>,
    %c0_1 = arith.constant 0 : index
    %c0_2 = arith.constant 0 : index
    %c0_3 = arith.constant 0 : index
    %2 = vector.load %arg1[%c0_1, %c0_2, %c0_3] : memref<1x4x256xf32, #tpu.memory_space<vmem>>, vector<1x4x16xf32>
    %3 = vector.shape_cast %2 : vector<1x4x16xf32> to vector<4x16xf32>
    %c0_4 = arith.constant 0 : index
    %c38 = arith.constant 38 : index
    %4 = vector.load %arg5[%c0_4, %c38] : memref<4x378xf32, #tpu.memory_space<vmem>>, vector<4x16xf32>
    tpu.vector_store %arg5[%c0_4, %c38], %3 {strides = array<i32>} : memref<4x378xf32, #tpu.memory_space<vmem>>, vector<4x16xf32>,
    %c0_5 = arith.constant 0 : index
    %c0_6 = arith.constant 0 : index
    %c16 = arith.constant 16 : index
    %5 = vector.load %arg1[%c0_5, %c0_6, %c16] : memref<1x4x256xf32, #tpu.memory_space<vmem>>, vector<1x4x16xf32>
    %6 = vector.shape_cast %5 : vector<1x4x16xf32> to vector<4x16xf32>
    %c0_7 = arith.constant 0 : index
    %c56 = arith.constant 56 : index
    %7 = vector.load %arg5[%c0_7, %c56] : memref<4x378xf32, #tpu.memory_space<vmem>>, vector<4x16xf32>
    tpu.vector_store %arg5[%c0_7, %c56], %6 {strides = array<i32>} : memref<4x378xf32, #tpu.memory_space<vmem>>, vector<4x16xf32>,
    %c0_8 = arith.constant 0 : index
    %c0_9 = arith.constant 0 : index
    %c32 = arith.constant 32 : index
    %8 = vector.load %arg1[%c0_8, %c0_9, %c32] : memref<1x4x256xf32, #tpu.memory_space<vmem>>, vector<1x4x16xf32>
    %9 = vector.shape_cast %8 : vector<1x4x16xf32> to vector<4x16xf32>
    %c0_10 = arith.constant 0 : index
    %c74 = arith.constant 74 : index
    %10 = vector.load %arg5[%c0_10, %c74] : memref<4x378xf32, #tpu.memory_space<vmem>>, vector<4x16xf32>
    tpu.vector_store %arg5[%c0_10, %c74], %9 {strides = array<i32>} : memref<4x378xf32, #tpu.memory_space<vmem>>, vector<4x16xf32>,
    %c0_11 = arith.constant 0 : index
    %c0_12 = arith.constant 0 : index
    %c48 = arith.constant 48 : index
    %11 = vector.load %arg1[%c0_11, %c0_12, %c48] : memref<1x4x256xf32, #tpu.memory_space<vmem>>, vector<1x4x16xf32>
    %12 = vector.shape_cast %11 : vector<1x4x16xf32> to vector<4x16xf32>
    %c0_13 = arith.constant 0 : index
    %c92 = arith.constant 92 : index
    %13 = vector.load %arg5[%c0_13, %c92] : memref<4x378xf32, #tpu.memory_space<vmem>>, vector<4x16xf32>
    tpu.vector_store %arg5[%c0_13, %c92], %12 {strides = array<i32>} : memref<4x378xf32, #tpu.memory_space<vmem>>, vector<4x16xf32>,
    %c0_14 = arith.constant 0 : index
    %c0_15 = arith.constant 0 : index
    %c64 = arith.constant 64 : index
    %14 = vector.load %arg1[%c0_14, %c0_15, %c64] : memref<1x4x256xf32, #tpu.memory_space<vmem>>, vector<1x4x16xf32>
    %15 = vector.shape_cast %14 : vector<1x4x16xf32> to vector<4x16xf32>
    %c0_16 = arith.constant 0 : index
    %c110 = arith.constant 110 : index
    %16 = vector.load %arg5[%c0_16, %c110] : memref<4x378xf32, #tpu.memory_space<vmem>>, vector<4x16xf32>
    tpu.vector_store %arg5[%c0_16, %c110], %15 {strides = array<i32>} : memref<4x378xf32, #tpu.memory_space<vmem>>, vector<4x16xf32>,
    %c0_17 = arith.constant 0 : index
    %c0_18 = arith.constant 0 : index
    %c80 = arith.constant 80 : index
    %17 = vector.load %arg1[%c0_17, %c0_18, %c80] : memref<1x4x256xf32, #tpu.memory_space<vmem>>, vector<1x4x16xf32>
    %18 = vector.shape_cast %17 : vector<1x4x16xf32> to vector<4x16xf32>
    %c0_19 = arith.constant 0 : index
    %c128 = arith.constant 128 : index
    %19 = vector.load %arg5[%c0_19, %c128] : memref<4x378xf32, #tpu.memory_space<vmem>>, vector<4x16xf32>
    tpu.vector_store %arg5[%c0_19, %c128], %18 {strides = array<i32>} : memref<4x378xf32, #tpu.memory_space<vmem>>, vector<4x16xf32>,
    %c0_20 = arith.constant 0 : index
    %c0_21 = arith.constant 0 : index
    %c96 = arith.constant 96 : index
    %20 = vector.load %arg1[%c0_20, %c0_21, %c96] : memref<1x4x256xf32, #tpu.memory_space<vmem>>, vector<1x4x16xf32>
    %21 = vector.shape_cast %20 : vector<1x4x16xf32> to vector<4x16xf32>
    %c0_22 = arith.constant 0 : index
    %c146 = arith.constant 146 : index
    %22 = vector.load %arg5[%c0_22, %c146] : memref<4x378xf32, #tpu.memory_space<vmem>>, vector<4x16xf32>
    tpu.vector_store %arg5[%c0_22, %c146], %21 {strides = array<i32>} : memref<4x378xf32, #tpu.memory_space<vmem>>, vector<4x16xf32>,
    %c0_23 = arith.constant 0 : index
    %c0_24 = arith.constant 0 : index
    %c112 = arith.constant 112 : index
    %23 = vector.load %arg1[%c0_23, %c0_24, %c112] : memref<1x4x256xf32, #tpu.memory_space<vmem>>, vector<1x4x16xf32>
    %24 = vector.shape_cast %23 : vector<1x4x16xf32> to vector<4x16xf32>
    %c0_25 = arith.constant 0 : index
    %c164 = arith.constant 164 : index
    %25 = vector.load %arg5[%c0_25, %c164] : memref<4x378xf32, #tpu.memory_space<vmem>>, vector<4x16xf32>
    tpu.vector_store %arg5[%c0_25, %c164], %24 {strides = array<i32>} : memref<4x378xf32, #tpu.memory_space<vmem>>, vector<4x16xf32>,
    %c0_26 = arith.constant 0 : index
    %c0_27 = arith.constant 0 : index
    %c128_28 = arith.constant 128 : index
    %26 = vector.load %arg1[%c0_26, %c0_27, %c128_28] : memref<1x4x256xf32, #tpu.memory_space<vmem>>, vector<1x4x16xf32>
    %27 = vector.shape_cast %26 : vector<1x4x16xf32> to vector<4x16xf32>
    %c0_29 = arith.constant 0 : index
    %c182 = arith.constant 182 : index
    %28 = vector.load %arg5[%c0_29, %c182] : memref<4x378xf32, #tpu.memory_space<vmem>>, vector<4x16xf32>
    tpu.vector_store %arg5[%c0_29, %c182], %27 {strides = array<i32>} : memref<4x378xf32, #tpu.memory_space<vmem>>, vector<4x16xf32>,
    %c0_30 = arith.constant 0 : index
    %c0_31 = arith.constant 0 : index
    %c144 = arith.constant 144 : index
    %29 = vector.load %arg1[%c0_30, %c0_31, %c144] : memref<1x4x256xf32, #tpu.memory_space<vmem>>, vector<1x4x16xf32>
    %30 = vector.shape_cast %29 : vector<1x4x16xf32> to vector<4x16xf32>
    %c0_32 = arith.constant 0 : index
    %c200 = arith.constant 200 : index
    %31 = vector.load %arg5[%c0_32, %c200] : memref<4x378xf32, #tpu.memory_space<vmem>>, vector<4x16xf32>
    tpu.vector_store %arg5[%c0_32, %c200], %30 {strides = array<i32>} : memref<4x378xf32, #tpu.memory_space<vmem>>, vector<4x16xf32>,
    %c0_33 = arith.constant 0 : index
    %c0_34 = arith.constant 0 : index
    %c160 = arith.constant 160 : index
    %32 = vector.load %arg1[%c0_33, %c0_34, %c160] : memref<1x4x256xf32, #tpu.memory_space<vmem>>, vector<1x4x16xf32>
    %33 = vector.shape_cast %32 : vector<1x4x16xf32> to vector<4x16xf32>
    %c0_35 = arith.constant 0 : index
    %c218 = arith.constant 218 : index
    %34 = vector.load %arg5[%c0_35, %c218] : memref<4x378xf32, #tpu.memory_space<vmem>>, vector<4x16xf32>
    tpu.vector_store %arg5[%c0_35, %c218], %33 {strides = array<i32>} : memref<4x378xf32, #tpu.memory_space<vmem>>, vector<4x16xf32>,
    %c0_36 = arith.constant 0 : index
    %c0_37 = arith.constant 0 : index
    %c176 = arith.constant 176 : index
    %35 = vector.load %arg1[%c0_36, %c0_37, %c176] : memref<1x4x256xf32, #tpu.memory_space<vmem>>, vector<1x4x16xf32>
    %36 = vector.shape_cast %35 : vector<1x4x16xf32> to vector<4x16xf32>
    %c0_38 = arith.constant 0 : index
    %c236 = arith.constant 236 : index
    %37 = vector.load %arg5[%c0_38, %c236] : memref<4x378xf32, #tpu.memory_space<vmem>>, vector<4x16xf32>
    tpu.vector_store %arg5[%c0_38, %c236], %36 {strides = array<i32>} : memref<4x378xf32, #tpu.memory_space<vmem>>, vector<4x16xf32>,
    %c0_39 = arith.constant 0 : index
    %c0_40 = arith.constant 0 : index
    %c192 = arith.constant 192 : index
    %38 = vector.load %arg1[%c0_39, %c0_40, %c192] : memref<1x4x256xf32, #tpu.memory_space<vmem>>, vector<1x4x16xf32>
    %39 = vector.shape_cast %38 : vector<1x4x16xf32> to vector<4x16xf32>
    %c0_41 = arith.constant 0 : index
    %c254 = arith.constant 254 : index
    %40 = vector.load %arg5[%c0_41, %c254] : memref<4x378xf32, #tpu.memory_space<vmem>>, vector<4x16xf32>
    tpu.vector_store %arg5[%c0_41, %c254], %39 {strides = array<i32>} : memref<4x378xf32, #tpu.memory_space<vmem>>, vector<4x16xf32>,
    %c0_42 = arith.constant 0 : index
    %c0_43 = arith.constant 0 : index
    %c208 = arith.constant 208 : index
    %41 = vector.load %arg1[%c0_42, %c0_43, %c208] : memref<1x4x256xf32, #tpu.memory_space<vmem>>, vector<1x4x16xf32>
    %42 = vector.shape_cast %41 : vector<1x4x16xf32> to vector<4x16xf32>
    %c0_44 = arith.constant 0 : index
    %c272 = arith.constant 272 : index
    %43 = vector.load %arg5[%c0_44, %c272] : memref<4x378xf32, #tpu.memory_space<vmem>>, vector<4x16xf32>
    tpu.vector_store %arg5[%c0_44, %c272], %42 {strides = array<i32>} : memref<4x378xf32, #tpu.memory_space<vmem>>, vector<4x16xf32>,
    %c0_45 = arith.constant 0 : index
    %c0_46 = arith.constant 0 : index
    %c224 = arith.constant 224 : index
    %44 = vector.load %arg1[%c0_45, %c0_46, %c224] : memref<1x4x256xf32, #tpu.memory_space<vmem>>, vector<1x4x16xf32>
    %45 = vector.shape_cast %44 : vector<1x4x16xf32> to vector<4x16xf32>
    %c0_47 = arith.constant 0 : index
    %c290 = arith.constant 290 : index
    %46 = vector.load %arg5[%c0_47, %c290] : memref<4x378xf32, #tpu.memory_space<vmem>>, vector<4x16xf32>
    tpu.vector_store %arg5[%c0_47, %c290], %45 {strides = array<i32>} : memref<4x378xf32, #tpu.memory_space<vmem>>, vector<4x16xf32>,
    %c0_48 = arith.constant 0 : index
    %c0_49 = arith.constant 0 : index
    %c240 = arith.constant 240 : index
    %47 = vector.load %arg1[%c0_48, %c0_49, %c240] : memref<1x4x256xf32, #tpu.memory_space<vmem>>, vector<1x4x16xf32>
    %48 = vector.shape_cast %47 : vector<1x4x16xf32> to vector<4x16xf32>
    %c0_50 = arith.constant 0 : index
    %c308 = arith.constant 308 : index
    %49 = vector.load %arg5[%c0_50, %c308] : memref<4x378xf32, #tpu.memory_space<vmem>>, vector<4x16xf32>
    tpu.vector_store %arg5[%c0_50, %c308], %48 {strides = array<i32>} : memref<4x378xf32, #tpu.memory_space<vmem>>, vector<4x16xf32>,
    %c0_51 = arith.constant 0 : index
    %c0_52 = arith.constant 0 : index
    %50 = vector.load %arg5[%c0_51, %c0_52] : memref<4x378xf32, #tpu.memory_space<vmem>>, vector<4x324xf32>
    %c0_53 = arith.constant 0 : index
    %c0_54 = arith.constant 0 : index
    %51 = vector.load %arg6[%c0_53, %c0_54] : memref<36x324xf32, #tpu.memory_space<vmem>>, vector<4x324xf32>
    tpu.vector_store %arg6[%c0_53, %c0_54], %50 {strides = array<i32>} : memref<36x324xf32, #tpu.memory_space<vmem>>, vector<4x324xf32>,
    %c0_55 = arith.constant 0 : index
    %c1 = arith.constant 1 : index
    %52 = vector.load %arg5[%c0_55, %c1] : memref<4x378xf32, #tpu.memory_space<vmem>>, vector<4x324xf32>
    %c4 = arith.constant 4 : index
    %c0_56 = arith.constant 0 : index
    %53 = vector.load %arg6[%c4, %c0_56] : memref<36x324xf32, #tpu.memory_space<vmem>>, vector<4x324xf32>
    tpu.vector_store %arg6[%c4, %c0_56], %52 {strides = array<i32>} : memref<36x324xf32, #tpu.memory_space<vmem>>, vector<4x324xf32>,
    %c0_57 = arith.constant 0 : index
    %c2 = arith.constant 2 : index
    %54 = vector.load %arg5[%c0_57, %c2] : memref<4x378xf32, #tpu.memory_space<vmem>>, vector<4x324xf32>
    %c8 = arith.constant 8 : index
    %c0_58 = arith.constant 0 : index
    %55 = vector.load %arg6[%c8, %c0_58] : memref<36x324xf32, #tpu.memory_space<vmem>>, vector<4x324xf32>
    tpu.vector_store %arg6[%c8, %c0_58], %54 {strides = array<i32>} : memref<36x324xf32, #tpu.memory_space<vmem>>, vector<4x324xf32>,
    %c0_59 = arith.constant 0 : index
    %c18 = arith.constant 18 : index
    %56 = vector.load %arg5[%c0_59, %c18] : memref<4x378xf32, #tpu.memory_space<vmem>>, vector<4x324xf32>
    %c12 = arith.constant 12 : index
    %c0_60 = arith.constant 0 : index
    %57 = vector.load %arg6[%c12, %c0_60] : memref<36x324xf32, #tpu.memory_space<vmem>>, vector<4x324xf32>
    tpu.vector_store %arg6[%c12, %c0_60], %56 {strides = array<i32>} : memref<36x324xf32, #tpu.memory_space<vmem>>, vector<4x324xf32>,
    %c0_61 = arith.constant 0 : index
    %c19 = arith.constant 19 : index
    %58 = vector.load %arg5[%c0_61, %c19] : memref<4x378xf32, #tpu.memory_space<vmem>>, vector<4x324xf32>
    %c16_62 = arith.constant 16 : index
    %c0_63 = arith.constant 0 : index
    %59 = vector.load %arg6[%c16_62, %c0_63] : memref<36x324xf32, #tpu.memory_space<vmem>>, vector<4x324xf32>
    tpu.vector_store %arg6[%c16_62, %c0_63], %58 {strides = array<i32>} : memref<36x324xf32, #tpu.memory_space<vmem>>, vector<4x324xf32>,
    %c0_64 = arith.constant 0 : index
    %c20 = arith.constant 20 : index
    %60 = vector.load %arg5[%c0_64, %c20] : memref<4x378xf32, #tpu.memory_space<vmem>>, vector<4x324xf32>
    %c20_65 = arith.constant 20 : index
    %c0_66 = arith.constant 0 : index
    %61 = vector.load %arg6[%c20_65, %c0_66] : memref<36x324xf32, #tpu.memory_space<vmem>>, vector<4x324xf32>
    tpu.vector_store %arg6[%c20_65, %c0_66], %60 {strides = array<i32>} : memref<36x324xf32, #tpu.memory_space<vmem>>, vector<4x324xf32>,
    %c0_67 = arith.constant 0 : index
    %c36 = arith.constant 36 : index
    %62 = vector.load %arg5[%c0_67, %c36] : memref<4x378xf32, #tpu.memory_space<vmem>>, vector<4x324xf32>
    %c24 = arith.constant 24 : index
    %c0_68 = arith.constant 0 : index
    %63 = vector.load %arg6[%c24, %c0_68] : memref<36x324xf32, #tpu.memory_space<vmem>>, vector<4x324xf32>
    tpu.vector_store %arg6[%c24, %c0_68], %62 {strides = array<i32>} : memref<36x324xf32, #tpu.memory_space<vmem>>, vector<4x324xf32>,
    %c0_69 = arith.constant 0 : index
    %c37 = arith.constant 37 : index
    %64 = vector.load %arg5[%c0_69, %c37] : memref<4x378xf32, #tpu.memory_space<vmem>>, vector<4x324xf32>
    %c28 = arith.constant 28 : index
    %c0_70 = arith.constant 0 : index
    %65 = vector.load %arg6[%c28, %c0_70] : memref<36x324xf32, #tpu.memory_space<vmem>>, vector<4x324xf32>
    tpu.vector_store %arg6[%c28, %c0_70], %64 {strides = array<i32>} : memref<36x324xf32, #tpu.memory_space<vmem>>, vector<4x324xf32>,
    %c0_71 = arith.constant 0 : index
    %c38_72 = arith.constant 38 : index
    %66 = vector.load %arg5[%c0_71, %c38_72] : memref<4x378xf32, #tpu.memory_space<vmem>>, vector<4x324xf32>
    %c32_73 = arith.constant 32 : index
    %c0_74 = arith.constant 0 : index
    %67 = vector.load %arg6[%c32_73, %c0_74] : memref<36x324xf32, #tpu.memory_space<vmem>>, vector<4x324xf32>
    tpu.vector_store %arg6[%c32_73, %c0_74], %66 {strides = array<i32>} : memref<36x324xf32, #tpu.memory_space<vmem>>, vector<4x324xf32>,
    %c0_75 = arith.constant 0 : index
    %c0_76 = arith.constant 0 : index
    %68 = vector.load %arg2[%c0_75, %c0_76] : memref<8x36xf32, #tpu.memory_space<vmem>>, vector<8x36xf32>
    %c0_77 = arith.constant 0 : index
    %c0_78 = arith.constant 0 : index
    %69 = vector.load %arg6[%c0_77, %c0_78] : memref<36x324xf32, #tpu.memory_space<vmem>>, vector<36x324xf32>
    %cst_79 = arith.constant dense<0.000000e+00> : vector<8x324xf32>
    %70 = tpu.matmul %68, %69, %cst_79 {dimension_numbers = #tpu.dot_dimension_numbers<[1], [0], [0], [1], [0, 0, 1, 1], [], []>} : vector<8x36xf32>, vector<36x324xf32>, vector<8x324xf32> -> vector<8x324xf32>
    %c0_80 = arith.constant 0 : index
    %c0_81 = arith.constant 0 : index
    %71 = vector.load %arg3[%c0_80, %c0_81] : memref<8x1xf32, #tpu.memory_space<vmem>>, vector<8x1xf32>
    %72 = vector.broadcast %71 : vector<8x1xf32> to vector<8x324xf32>
    %73 = arith.addf %70, %72 : vector<8x324xf32>
    %cst_82 = arith.constant 0.000000e+00 : f32
    %74 = vector.broadcast %cst_82 : f32 to vector<8x324xf32>
    %75 = arith.maximumf %73, %74 : vector<8x324xf32>
    %c0_83 = arith.constant 0 : index
    %c0_84 = arith.constant 0 : index
    %c0_85 = arith.constant 0 : index
    %76 = vector.load %arg4[%c0_83, %c0_84, %c0_85] : memref<1x8x324xf32, #tpu.memory_space<vmem>>, vector<1x8x324xf32>
    %77 = vector.shape_cast %76 : vector<1x8x324xf32> to vector<8x324xf32>
    %78 = vector.shape_cast %75 : vector<8x324xf32> to vector<1x8x324xf32>
    tpu.vector_store %arg4[%c0_83, %c0_84, %c0_85], %78 {strides = array<i32>} : memref<1x8x324xf32, #tpu.memory_space<vmem>>, vector<1x8x324xf32>,
    return
  }
  func.func @transform_0(%arg0: i32) -> (i32, i32, i32) {
    %c0_i32 = arith.constant 0 : i32
    %c0_i32_0 = arith.constant 0 : i32
    %c0_i32_1 = arith.constant 0 : i32
    return %arg0, %c0_i32, %c0_i32_0 : i32, i32, i32
  }
  func.func @transform_1(%arg0: i32) -> (i32, i32) {
    %c0_i32 = arith.constant 0 : i32
    %c0_i32_0 = arith.constant 0 : i32
    %c0_i32_1 = arith.constant 0 : i32
    return %c0_i32, %c0_i32_0 : i32, i32
  }
  func.func @transform_2(%arg0: i32) -> (i32, i32) {
    %c0_i32 = arith.constant 0 : i32
    %c0_i32_0 = arith.constant 0 : i32
    %c0_i32_1 = arith.constant 0 : i32
    return %c0_i32, %c0_i32_0 : i32, i32
  }
  func.func @transform_3(%arg0: i32) -> (i32, i32, i32) {
    %c0_i32 = arith.constant 0 : i32
    %c0_i32_0 = arith.constant 0 : i32
    %c0_i32_1 = arith.constant 0 : i32
    return %arg0, %c0_i32, %c0_i32_0 : i32, i32, i32
  }
}

</mosaic_0001>

<bundles_post_ra>
// kernel: convt_relu.1
= control target key start
LH: loop header
LB: loop body
LE: loop exit
PB: predicated region body
PF: predicated region fallthrough
CT: control target
= control target key end

     0   :  { %s853_s12 = smov 0   ;;  %s924_s0 = inlined_call_operand.vmem [shape: f32[2,4,256], index: 0, kind: input, shape index: {}]   ;;  %s925_s1 = inlined_call_operand.vmem [shape: f32[8,36], index: 1, kind: input, shape index: {}]   ;;  %s926_s2 = inlined_call_operand.vmem [shape: f32[8,1], index: 2, kind: input, shape index: {}]   ;;  %s927_s3 = inlined_call_operand.vmem [shape: f32[2,8,324], index: 3, kind: output, shape index: {}]  }
   0x1 LB: > { %s704_s13 = sadd.s32 4294967295, %s803_s12   ;;  %p708_p0 = scmp.ge.s32.totalorder %s803_s12, 1  ;;  %s803_s12 = sphi %s853_s12, %s13_s12  }
   0x2   : > { %p137_p1 = scmp.lt.s32.totalorder %s803_s12, 3 }
   0x4   : > { %p138_p2 = pnand %p708_p0, %p137_p1 }
   0x5   : > { %p161_p3 = scmp.lt.s32.totalorder (!%p138_p2), %s704_s13, 1  ;;  %v805_v0 = vmov (!%p138_p2), 0.0   ;;  %s806_s18 = smov (!%p138_p2), 48   ;;  %vm172_vm0 = vcmask (!%p138_p2), 994304   ;;  %vm214_vm1 = vcmask (!%p138_p2), 125952   ;;  %vm221_vm2 = vcmask (!%p138_p2), 273552  }
   0x6   : > { %141 = sbr.rel (%p138_p2) target bundleno = 557 (0x22d), region = 32  ;;  %171 = vst [vmem:[#allocation2] sm:$0xff] (!%p138_p2), %v805_v0  ;;  %565 = vmatprep.mubr.f32.mxu0 (!%p138_p2), %v805_v0  ;;  %s807_s19 = smov (!%p138_p2), 52   ;;  %173 = vst.msk [vmem:[#allocation2 + $0x8] sm:$0xf] (!%p138_p2), %vm172_vm0, %v805_v0  ;;  %vm228_vm3 = vcmask (!%p138_p2), 421152  }
   0x7   : > { %s808_s20 = smov (!%p138_p2), 50   ;;  %s809_s21 = smov (!%p138_p2), 54   ;;  %vm235_vm4 = vcmask (!%p138_p2), 568752   ;;  %vm242_vm5 = vcmask (!%p138_p2), 716352   ;;  %vm249_vm6 = vcmask (!%p138_p2), 863952   ;;  %vm179_vm7 = vcmask (!%p138_p2), 437552  }
   0x8   : > { %s810_s22 = smov (!%p138_p2), 56   ;;  %s811_s23 = smov (!%p138_p2), 62   ;;  %vm263_vm8 = vcmask (!%p138_p2), 506880   ;;  %vm266_vm9 = vcmask (!%p138_p2), 1044464   ;;  %vm267_vm10 = vcmask (!%p138_p2), 113668   ;;  %vm256_vm11 = vcmask (!%p138_p2), 1011552  }
   0x9   : > { %s812_s24 = smov (!%p138_p2), 58   ;;  %s813_s25 = smov (!%p138_p2), 38   ;;  %vm186_vm12 = vcmask (!%p138_p2), 585152   ;;  %vm268_vm13 = vmor (!%p138_p2), %vm267_vm10, %vm266_vm9  ;;  %vm193_vm14 = vcmask (!%p138_p2), 732752   ;;  %vm275_vm15 = vcmask (!%p138_p2), 257152   ;;  %vm200_vm0 = vcmask (!%p138_p2), 880352  }
   0xa   : > { %s814_s26 = smov (!%p138_p2), 60   ;;  %s815_s27 = smov (!%p138_p2), 40   ;;  %v829_v43 = vmov (!%p138_p2), 0.0|0.0   ;;  %v832_v48 = vmov (!%p138_p2), 0   ;;  %v481_v49 = vld [vmem:[%s926_s2] sm:$0xff] (!%p138_p2)  ;;  %vm374_vm9 = vcmask (!%p138_p2), 891904  }
   0xb   : > { %s816_s28 = smov (!%p138_p2), 42   ;;  %s817_s29 = smov (!%p138_p2), 64   ;;  %747 = vmatprep.subr.bf16.mxu1 (!%p138_p2), %v829_v43  ;;  %790 = vset.pattern.permute.xlu0 (!%p138_p2), %v832_v48  ;;  %vm395_vm10 = vcmask (!%p138_p2), 883712  }
   0xc   : > { %s818_s30 = smov (!%p138_p2), 44   ;;  %s819_s4 = smov (!%p138_p2), 66  }
   0xd   : > { %s929_s13 = smov (!%p161_p3, %s704_s13), 1  ;;  %s820_s5 = smov 46  }
   0xe   : > { %s719_s14 = sshll.u32 %s929_s13, 3  ;;  %s821_s6 = smov 68  }
   0xf   : > { %s869_s17 = scalar_lea.vmem %s924_s0, %s719_s14  ;;  %s822_s7 = smov 126  }
  0x10   : > { %v209_v1 = vld [vmem:[%s869_s17] sm:$0xf]  ;;  %v230_v4 = vld [vmem:[%s869_s17 + $0x4] sm:$0xf]  ;;  %s823_s8 = smov 127   ;;  %s824_s9 = smov 108  }
  0x11   : > { %v223_v2 = vld [vmem:[%s869_s17] sm:$0xf]  ;;  %211 = vrot.lane.b32.xlu0 %v209_v1, %s806_s18  ;;  %v237_v5 = vld [vmem:[%s869_s17 + $0x4] sm:$0xf]  ;;  %s825_s10 = smov 110   ;;  %s826_s11 = smov 91  }
  0x12   : > { %225 = vrot.lane.b32.xlu1 %v223_v2, %s807_s19  ;;  %v216_v3 = vld [vmem:[%s869_s17] sm:$0xf]  ;;  %v258_v6 = vld [vmem:[%s869_s17 + $0x4] sm:$0xf]  ;;  %s827_s14 = smov 109   ;;  %s828_s15 = smov 92  }
  0x13   : > { %v244_v7 = vld [vmem:[%s869_s17 + $0x4] sm:$0xf]  ;;  %v174_v8 = vld [vmem:[%s869_s17] sm:$0xf]  ;;  %s830_s16 = smov 90  }
  0x14   : > { %v251_v9 = vld [vmem:[%s869_s17 + $0x4] sm:$0xf]  ;;  %v181_v10 = vld [vmem:[%s869_s17] sm:$0xf] }
  0x15   : > { %218 = vrot.lane.b32.xlu0 %v216_v3, %s808_s20  ;;  %v188_v11 = vld [vmem:[%s869_s17] sm:$0xf]  ;;  %v270_v12 = vld [vmem:[%s869_s17 + $0x4] sm:$0xf] }
  0x16   : > { %232 = vrot.lane.b32.xlu1 %v230_v4, %s809_s21  ;;  %v195_v13 = vld [vmem:[%s869_s17] sm:$0xf]  ;;  %v277_v14 = vld [vmem:[%s869_s17 + $0x4] sm:$0xf]  ;;  %s753_s21 = smul.u32 24, %s929_s13 }
  0x17   : > { %v202_v15 = vld [vmem:[%s869_s17] sm:$0xf]  ;;  %v284_v16 = vld [vmem:[%s869_s17 + $0x4] sm:$0xf] }
  0x19   : > { %239 = vrot.lane.b32.xlu0 %v237_v5, %s810_s22 }
  0x1a   : > { %260 = vrot.lane.b32.xlu1 %v258_v6, %s811_s23 }
  0x1d   : > { %246 = vrot.lane.b32.xlu0 %v244_v7, %s812_s24  ;;  %s170_s24 = scalar_lea.vmem %s927_s3, %s753_s21 }
  0x1e   : > { %176 = vrot.lane.b32.xlu1 %v174_v8, %s813_s25 }
  0x21   : > { %253 = vrot.lane.b32.xlu0 %v251_v9, %s814_s26 }
  0x22   : > { %183 = vrot.lane.b32.xlu1 %v181_v10, %s815_s27 }
  0x25   : > { %190 = vrot.lane.b32.xlu0 %v188_v11, %s816_s28 }
  0x26   : > { %272 = vrot.lane.b32.xlu1 %v270_v12, %s817_s29 }
  0x29   : > { %197 = vrot.lane.b32.xlu0 %v195_v13, %s818_s30 }
  0x2a   : > { %279 = vrot.lane.b32.xlu1 %v277_v14, %s819_s4 }
  0x2d   : > { %204 = vrot.lane.b32.xlu0 %v202_v15, %s820_s5 }
  0x2e   : > { %286 = vrot.lane.b32.xlu1 %v284_v16, %s821_s6 }
  0x83   : > { %v212_v17 = vpop.permute.xlu0 %211 }
  0x84   : > { %v226_v18 = vpop.permute.xlu1 %225  ;;  %215 = vst.msk [vmem:[#allocation2 + $0x4] sm:$0xf] %vm214_vm1, %v212_v17  ;;  %vm282_vm1 = vcmask 404752  }
  0x87   : > { %v219_v19 = vpop.permute.xlu0 %218 }
  0x88   : > { %v233_v20 = vpop.permute.xlu1 %232  ;;  %222 = vst.msk [vmem:[#allocation2 + $0x4] sm:$0xf] %vm221_vm2, %v219_v19  ;;  %vm207_vm2 = vcmask 1027952  }
  0x89   : > { %229 = vst.msk [vmem:[#allocation2 + $0x4] sm:$0xf] %vm228_vm3, %v226_v18  ;;  %vm289_vm3 = vcmask 552352  }
  0x8a   : > { %236 = vst.msk [vmem:[#allocation2 + $0x4] sm:$0xf] %vm235_vm4, %v233_v20  ;;  %vm298_vm4 = vcmask 551936  }
  0x8b   : > { %v240_v21 = vpop.permute.xlu0 %239 }
  0x8c   : > { %v261_v22 = vpop.permute.xlu1 %260  ;;  %243 = vst.msk [vmem:[#allocation2 + $0x4] sm:$0xf] %vm242_vm5, %v240_v21  ;;  %vm831_vm5 = vmmov 0  }
  0x8d   : > { %v262_v23 = vrot.slane %v261_v22, 4  ;;  %736 = vmatprep.mubr.msk.f32.mxu1 %vm831_vm5, %v805_v0 }
  0x8f   : > { %v247_v24 = vpop.permute.xlu0 %246  ;;  %v264_v26 = vsel %vm263_vm8, %v262_v23, %v261_v22  ;;  %vm354_vm8 = vcmask 900096  }
  0x90   : > { %v177_v25 = vpop.permute.xlu1 %176  ;;  %250 = vst.msk [vmem:[#allocation2 + $0x4] sm:$0xf] %vm249_vm6, %v247_v24  ;;  %vm333_vm6 = vcmask 1031168  }
  0x91   : > { %180 = vst.msk [vmem:[#allocation2] sm:$0xf] %vm179_vm7, %v177_v25  ;;  %vm312_vm7 = vcmask 1039360  }
  0x93   : > { %v254_v27 = vpop.permute.xlu0 %253 }
  0x94   : > { %v184_v28 = vpop.permute.xlu1 %183  ;;  %257 = vst.msk [vmem:[#allocation2 + $0x4] sm:$0xf] %vm256_vm11, %v254_v27  ;;  %vm415_vm11 = vcmask 752640  }
  0x95   : > { %187 = vst.msk [vmem:[#allocation2] sm:$0xf] %vm186_vm12, %v184_v28  ;;  %vm320_vm12 = vcmask 556036  }
  0x96   : > { %269 = vst.msk [vmem:[#allocation2 + $0x4] sm:$0xff] %vm268_vm13, %v264_v26  ;;  %vm436_vm13 = vcmask 744448  }
  0x97   : > { %v191_v29 = vpop.permute.xlu0 %190 }
  0x98   : > { %v273_v30 = vpop.permute.xlu1 %272  ;;  %194 = vst.msk [vmem:[#allocation2] sm:$0xf] %vm193_vm14, %v191_v29  ;;  %vm456_vm14 = vcmask 736256  }
  0x99   : > { %276 = vst.msk [vmem:[#allocation2 + $0x8] sm:$0xf] %vm275_vm15, %v273_v30  ;;  %vm491_vm15 = vcmask 1043456  }
  0x9b   : > { %v198_v31 = vpop.permute.xlu0 %197 }
  0x9c   : > { %v280_v32 = vpop.permute.xlu1 %279  ;;  %201 = vst.msk [vmem:[#allocation2] sm:$0xf] %vm200_vm0, %v198_v31  ;;  %vm487_vm0 = vcmask 293888  }
  0x9d   : > { %283 = vst.msk [vmem:[#allocation2 + $0x8] sm:$0xf] %vm282_vm1, %v280_v32  ;;  %vm647_vm1 = vcmask 556032  }
  0x9f   : > { %v205_v33 = vpop.permute.xlu0 %204 }
  0xa0   : > { %v287_v34 = vpop.permute.xlu1 %286  ;;  %208 = vst.msk [vmem:[#allocation2] sm:$0xf] %vm207_vm2, %v205_v33 }
  0xa1   : > { %290 = vst.msk [vmem:[#allocation2 + $0x8] sm:$0xf] %vm289_vm3, %v287_v34 }
  0xa7   : > { %v291_v35 = vld [vmem:[#allocation2] sm:$0xff] }
  0xa8   : > { %296 = vst [vmem:[#allocation3] sm:$0xf] %v291_v35  ;;  %327 = vrot.lane.b32.xlu1 %v291_v35, %s822_s7  ;;  %v326_v36 = vcombine.high %v291_v35, %v291_v35  ;;  %308 = vrot.lane.b32.xlu0 %v291_v35, %s823_s8  ;;  %v292_v37 = vld [vmem:[#allocation2 + $0x8] sm:$0xf]  ;;  %v304_v38 = vcombine.low %v291_v35, %v291_v35 }
  0xa9   : > { %299 = vst.msk [vmem:[#allocation3 + $0x10] sm:$0xf] %vm298_vm4, %v292_v37  ;;  %v364_v39 = vld [vmem:[#allocation2 + $0x8] sm:$0xf] }
  0xaa   : > { %297 = vst [vmem:[#allocation3 + $0x8] sm:$0xf] %v326_v36  ;;  %v323_v40 = vld [vmem:[#allocation2 + $0x8] sm:$0xf] }
  0xab   : > { %v793_v41 = vld [vmem:[#allocation2 + $0x8] ss:$0 sps:$4 sm:$0xff]  }
  0xac   : > { %391 = vrot.lane.b32.xlu1 %v291_v35, %s824_s9  ;;  %350 = vrot.lane.b32.xlu0 %v291_v35, %s825_s10  ;;  %v405_v42 = vld [vmem:[#allocation2 + $0x8] sm:$0xf] }
  0xad   : > { %v794_v44 = vld [vmem:[#allocation2 + $0x8] ss:$0 sps:$4 sm:$0xff]  }
  0xae   : > { %v795_v45 = vld [vmem:[#allocation2 + $0x8] ss:$0 sps:$4 sm:$0xff]  }
  0xaf   : > { %v796_v46 = vld [vmem:[#allocation2 + $0x8] ss:$0 sps:$4 sm:$0xff]  }
  0xb0   : > { %432 = vrot.lane.b32.xlu1 %v291_v35, %s826_s11  ;;  %329 = vrot.lane.b32.xlu0 %v326_v36, %s822_s7  ;;  %v446_v47 = vld [vmem:[#allocation2 + $0x8] sm:$0xf] }
  0xb4   : > { %368 = vrot.lane.b32.xlu1 %v291_v35, %s827_s14  ;;  %306 = vrot.lane.b32.xlu0 %v304_v38, %s823_s8 }
  0xb8   : > { %370 = vrot.lane.b32.xlu1 %v326_v36, %s827_s14  ;;  %348 = vrot.lane.b32.xlu0 %v304_v38, %s825_s10 }
  0xbc   : > { %411 = vrot.lane.b32.xlu1 %v326_v36, %s828_s15  ;;  %389 = vrot.lane.b32.xlu0 %v304_v38, %s824_s9 }
  0xc0   : > { %372 = vrot.lane.b32.xlu0 %v364_v39, %s827_s14  ;;  %331 = vrot.lane.b32.xlu1 %v323_v40, %s822_s7 }
  0xc4   : > { %413 = vrot.lane.b32.xlu0 %v405_v42, %s828_s15  ;;  %310 = vrot.lane.b32.xlu1 %v793_v41, %s823_s8 }
  0xc8   : > { %393 = vrot.lane.b32.xlu0 %v794_v44, %s824_s9  ;;  %352 = vrot.lane.b32.xlu1 %v795_v45, %s825_s10  ;;  %v465_v45 = vld [vmem:[%s925_s1] sm:$0xff] }
  0xcc   : > { %434 = vrot.lane.b32.xlu0 %v796_v46, %s826_s11  ;;  %409 = vrot.lane.b32.xlu1 %v291_v35, %s828_s15 }
  0xd0   : > { %430 = vrot.lane.b32.xlu0 %v304_v38, %s826_s11  ;;  %452 = vrot.lane.b32.xlu1 %v326_v36, %s830_s16 }
  0xd4   : > { %454 = vrot.lane.b32.xlu0 %v446_v47, %s830_s16  ;;  %450 = vrot.lane.b32.xlu1 %v291_v35, %s830_s16 }
  0xd8   : > { %484 = vperm.xlu0 %790, %v481_v49  }
 0x11a   : > { %v309_v50 = vpop.permute.xlu0 %308  ;;  %v328_v51 = vpop.permute.xlu1 %327 }
 0x11e   : > { %v351_v52 = vpop.permute.xlu0 %350  ;;  %v392_v53 = vpop.permute.xlu1 %391 }
 0x122   : > { %v330_v54 = vpop.permute.xlu0 %329  ;;  %v433_v55 = vpop.permute.xlu1 %432 }
 0x123   : > { %v334_v56 = vsel %vm333_vm6, %v328_v51, %v330_v54 }
 0x124   : > { %339 = vst [vmem:[#allocation3 + $0x18] sm:$0xf] %v334_v56 }
 0x126   : > { %v307_v57 = vpop.permute.xlu0 %306  ;;  %v369_v58 = vpop.permute.xlu1 %368 }
 0x127   : > { %v313_v59 = vsel %vm312_vm7, %v307_v57, %v309_v50 }
 0x128   : > { %318 = vst [vmem:[#allocation3] sm:$0xf0] %v313_v59 }
 0x12a   : > { %v349_v60 = vpop.permute.xlu0 %348  ;;  %v371_v61 = vpop.permute.xlu1 %370 }
 0x12b   : > { %v355_v62 = vsel %vm354_vm8, %v349_v60, %v351_v52  ;;  %v375_v63 = vsel %vm374_vm9, %v369_v58, %v371_v61 }
 0x12c   : > { %360 = vst [vmem:[#allocation3 + $0x18] sm:$0xf0] %v355_v62  ;;  %380 = vst [vmem:[#allocation3 + $0x30] sm:$0xf] %v375_v63 }
 0x12e   : > { %v390_v1 = vpop.permute.xlu0 %389  ;;  %v412_v2 = vpop.permute.xlu1 %411 }
 0x12f   : > { %v396_v3 = vsel %vm395_vm10, %v390_v1, %v392_v53  ;;  %v466_v30 = vld [vmem:[#allocation3] sm:$0xff] }
 0x130   : > { %401 = vst [vmem:[#allocation3 + $0x30] sm:$0xf0] %v396_v3 }
 0x132   : > { %v373_v4 = vpop.permute.xlu0 %372  ;;  %v332_v5 = vpop.permute.xlu1 %331 }
 0x133   : > { %v376_v6 = vsel %vm374_vm9, %v371_v61, %v373_v4  ;;  %382 = vst.msk [vmem:[#allocation3 + $0x40] sm:$0xf] %vm298_vm4, %v373_v4  ;;  %v335_v7 = vsel %vm333_vm6, %v330_v54, %v332_v5  ;;  %341 = vst.msk [vmem:[#allocation3 + $0x28] sm:$0xf] %vm298_vm4, %v332_v5  ;;  %v469_v24 = vld [vmem:[#allocation3 + $0x18] sm:$0xff] }
 0x134   : > { %381 = vst [vmem:[#allocation3 + $0x38] sm:$0xf] %v376_v6  ;;  %340 = vst [vmem:[#allocation3 + $0x20] sm:$0xf] %v335_v7  ;;  %v741_v31 = vpack.c.bf16 %v469_v24, %v466_v30 }
 0x136   : > { %v414_v8 = vpop.permute.xlu0 %413  ;;  %v311_v9 = vpop.permute.xlu1 %310 }
 0x137   : > { %v417_v10 = vsel %vm415_vm11, %v412_v2, %v414_v8  ;;  %423 = vst.msk [vmem:[#allocation3 + $0x58] sm:$0xf] %vm298_vm4, %v414_v8  ;;  %v314_v11 = vsel %vm312_vm7, %v309_v50, %v311_v9  ;;  %v472_v42 = vld [vmem:[#allocation3 + $0x30] sm:$0xff] }
 0x138   : > { %321 = vst.msk [vmem:[#allocation3 + $0x10] sm:$0xf0] %vm320_vm12, %v311_v9  ;;  %422 = vst [vmem:[#allocation3 + $0x50] sm:$0xf] %v417_v10 }
 0x139   : > { %319 = vst [vmem:[#allocation3 + $0x8] sm:$0xf0] %v314_v11 }
 0x13a   : > { %v394_v12 = vpop.permute.xlu0 %393  ;;  %v353_v13 = vpop.permute.xlu1 %352 }
 0x13b   : > { %v397_v14 = vsel %vm395_vm10, %v392_v53, %v394_v12  ;;  %403 = vst.msk [vmem:[#allocation3 + $0x40] sm:$0xf0] %vm320_vm12, %v394_v12  ;;  %v356_v15 = vsel %vm354_vm8, %v351_v52, %v353_v13  ;;  %362 = vst.msk [vmem:[#allocation3 + $0x28] sm:$0xf0] %vm320_vm12, %v353_v13 }
 0x13c   : > { %402 = vst [vmem:[#allocation3 + $0x38] sm:$0xf0] %v397_v14  ;;  %361 = vst [vmem:[#allocation3 + $0x20] sm:$0xf0] %v356_v15 }
 0x13e   : > { %v435_v16 = vpop.permute.xlu0 %434  ;;  %v410_v17 = vpop.permute.xlu1 %409 }
 0x13f   : > { %v438_v18 = vsel %vm436_vm13, %v433_v55, %v435_v16  ;;  %444 = vst.msk [vmem:[#allocation3 + $0x58] sm:$0xf0] %vm320_vm12, %v435_v16  ;;  %v416_v19 = vsel %vm415_vm11, %v410_v17, %v412_v2  ;;  %v468_v22 = vld [vmem:[#allocation3 + $0x10] sm:$0xff] }
 0x140   : > { %443 = vst [vmem:[#allocation3 + $0x50] sm:$0xf0] %v438_v18  ;;  %421 = vst [vmem:[#allocation3 + $0x48] sm:$0xf] %v416_v19  ;;  %v467_v27 = vld [vmem:[#allocation3 + $0x8] sm:$0xff] }
 0x142   : > { %v431_v20 = vpop.permute.xlu0 %430  ;;  %v453_v21 = vpop.permute.xlu1 %452  ;;  %v471_v23 = vld [vmem:[#allocation3 + $0x28] sm:$0xff]  ;;  %v474_v34 = vld [vmem:[#allocation3 + $0x40] sm:$0xff] }
 0x143   : > { %v437_v25 = vsel %vm436_vm13, %v431_v20, %v433_v55  ;;  %v748_v26 = vpack.c.bf16 %v471_v23, %v468_v22  ;;  %v470_v28 = vld [vmem:[#allocation3 + $0x20] sm:$0xff]  ;;  %v473_v39 = vld [vmem:[#allocation3 + $0x38] sm:$0xff] }
 0x144   : > { %442 = vst [vmem:[#allocation3 + $0x48] sm:$0xf0] %v437_v25  ;;  %v739_v29 = vpack.c.bf16 %v470_v28, %v467_v27 }
 0x145   : > { %749 = vmatpush3.bf16.msra.mxu1 %v748_v26 }
 0x146   : > { %v455_v32 = vpop.permute.xlu0 %454  ;;  %740 = vmatprep.subr.bf16.mxu0 %v739_v29  ;;  %v451_v33 = vpop.permute.xlu1 %450  ;;  %750 = vmatprep.subr.bf16.mxu1 %v829_v43  ;;  %v477_v35 = vld [vmem:[#allocation3 + $0x58] sm:$0xff] }
 0x147   : > { %v458_v36 = vsel %vm456_vm14, %v453_v21, %v455_v32  ;;  %464 = vst.msk [vmem:[#allocation3 + $0x70] sm:$0xf] %vm298_vm4, %v455_v32  ;;  %v457_v37 = vsel %vm456_vm14, %v451_v33, %v453_v21  ;;  %742 = vmatpush1.bf16.msra.mxu0 %v741_v31  ;;  %v751_v38 = vpack.c.bf16 %v477_v35, %v474_v34  ;;  %v476_v40 = vld [vmem:[#allocation3 + $0x50] sm:$0xff] }
 0x148   : > { %463 = vst [vmem:[#allocation3 + $0x68] sm:$0xf] %v458_v36  ;;  %462 = vst [vmem:[#allocation3 + $0x60] sm:$0xf] %v457_v37  ;;  %v743_v41 = vpack.c.bf16 %v476_v40, %v473_v39 }
 0x149   : > { %752 = vmatpush3.bf16.msra.mxu1 %v751_v38 }
 0x14a   : > { %744 = vmatprep.subr.bf16.mxu0 %v743_v41  ;;  %734 = vmatprep.subr.mxu1 %v805_v0 }
 0x14b   : > { %v475_v43 = vld [vmem:[#allocation3 + $0x48] sm:$0xff] }
 0x14c   : > { %v745_v44 = vpack.c.bf16 %v475_v43, %v472_v42 }
 0x14e   : > { %746 = vmatpush1.bf16.msra.mxu0 %v745_v44  ;;  %v480_v46 = vld [vmem:[#allocation3 + $0x70] sm:$0xf] }
 0x14f   : > { %735 = vmatpush3.msk.msra.mxu1 %vm491_vm15, %v480_v46  ;;  %v479_v47 = vld [vmem:[#allocation3 + $0x68] sm:$0xf]  ;;  %v478_v48 = vld [vmem:[#allocation3 + $0x60] sm:$0xf] }
 0x150   : > { %712 = vmatprep.subr.msk.mxu0 %vm491_vm15, %v479_v47  ;;  %737 = vmatmul.mubr.msk.f32.vlgmr.msra.gmra.mrb[0].mxu1 %vm487_vm0, %v465_v45 }
 0x152   : > { %713 = vmatpush1.msk.msra.mxu0 %vm491_vm15, %v478_v48 }
 0x153   : > { %714 = vmatmul.mubr.msk.f32.vlgmr.msra.gmra.mrb[0].mxu0 %vm487_vm0, %v465_v45 }
 0x157   : > { %v485_v0 = vpop.permute.xlu0 %484 }
 0x223   : > { %v638_v49 = vpop.f32.mrb[0].mxu1 }
 0x224   : > { %v639_v50 = vadd.f32 %v638_v49, %v485_v0  ;;  %v738_v51 = vpop.f32.mrb[1].mxu1 }
 0x226   : > { %v567_v52 = vpop.f32.mrb[0].mxu0  ;;  %v644_v53 = vmax.f32 %v639_v50, 0.0 }
 0x227   : > { %v568_v54 = vadd.f32 %v567_v52, %v485_v0  ;;  %v569_v55 = vpop.f32.mrb[1].mxu0 }
 0x228   : > { %648 = vst.msk [vmem:[%s170_s24 + $0x10] sm:$0xff] %vm647_vm1, %v644_v53  ;;  %v570_v56 = vadd.f32 %v569_v55, %v485_v0 }
 0x229   : > { %v642_v57 = vmax.f32 %v568_v54, 0.0 }
 0x22a   : > { %v643_v58 = vmax.f32 %v570_v56, 0.0 }
 0x22b   : > { %645 = vst [vmem:[%s170_s24] sm:$0xff] %v642_v57 }
 0x22c   : > { %646 = vst [vmem:[%s170_s24 + $0x8] sm:$0xff] %v643_v58 }
 0x22d PF: > { %s13_s12 = sadd.s32 1, %s803_s12  }
 0x22e   : > { %p10_p4 = scmp.ge.s32.totalorder %s13_s12, 4  }
 0x230   :  { %12 = sbr.rel (!%p10_p4) target bundleno = 1 (0x1), region = 62 }

</bundles_post_ra>
